<compile_context>
chip_gen: v5e
topology: v5e:2x2
jax: 0.10.0
libtpu: 0.0.40
codegen_flags: <defaults>
</compile_context>

<pallas_src>
import functools

import jax
import jax.numpy as jnp
from jax.experimental import pallas as pl
from jax.experimental.pallas import tpu as pltpu


def _smooth_kernel(mask_ref, pts_ref, out_ref, *, rows_total, point_dim):
    """One grid step: one (tb, lc) slab of the flattened points.

    mask_ref: (1, lc) int32 resident valid-lane mask (precomputed in wrapper).
    pts_ref:  (tb, lc) block of the (B, N*D) flattened points (boundary blocks
              may contain unspecified padding in the ragged rows / lanes).
    out_ref:  (8, 128) lane-dense per-block partial sum (f32).
    """
    x = pts_ref[...]                                    # (tb, lc), native dtype
    tb, lc = x.shape

    # Consecutive-point diff as a full-width XLU lane rotation in the native
    # dtype (bf16 inputs: half the rotate vregs / VMEM); x_prev[:, j] = x[:, j-D].
    x_prev = pltpu.roll(x, point_dim, 1)
    diff = x.astype(jnp.float32) - x_prev.astype(jnp.float32)

    # Resident valid-lane mask (j % lc >= D and j < N*D), broadcast over rows.
    lane_ok = mask_ref[...] != 0                        # (1, lc) bool

    if rows_total % tb != 0:
        # Ragged last batch block: rows >= rows_left hold unspecified padding.
        bb = pl.program_id(0)
        rows_left = rows_total - bb * tb
        row_ok = jax.lax.broadcasted_iota(jnp.int32, (tb, lc), 0) < rows_left
        ok = jnp.logical_and(row_ok, lane_ok)
    else:
        ok = lane_ok

    # where-SELECT (not multiply) so padding garbage (possibly NaN/Inf) never
    # reaches the reduction.
    d = jnp.where(ok, diff, 0.0)
    sq = d * d                                          # (tb, lc) f32

    # Reduce only across whole (8, 128) vreg tiles: pure VPU adds, no in-kernel
    # cross-lane (XLU) reduction.  Result is a lane-dense (8, 128) partial.
    r = jnp.sum(sq.reshape(tb // 8, 8, lc), axis=0)     # fold sublane groups
    acc = r[:, 0:128]
    for i in range(1, lc // 128):                       # fold 128-lane groups
        acc = acc + r[:, i * 128:(i + 1) * 128]
    out_ref[...] = acc


def smooth_forward(points, *, target_block_bytes=4 * 1024 * 1024):
    """points: (B, N, D) float array -> scalar float32 = sum(diff**2) / 100."""
    B, N, D = points.shape
    F = N * D
    x = points.reshape(B, F)          # D contiguous -> free reshape, no HBM copy

    # ---- block sizing (budget in f32-equivalent elements so the input double
    # buffer + f32 temporaries stay well inside the 32 MiB scoped VMEM limit).
    elem_budget = max(8 * 128, target_block_bytes // 4)
    fp_min = max(128, pl.cdiv(F, 128) * 128)
    if 8 * fp_min <= elem_budget:
        lc = fp_min                                      # single lane chunk
        tb = max(8, (elem_budget // lc) // 8 * 8)        # rows per block
        tb = min(tb, max(8, pl.cdiv(B, 8) * 8))
    else:
        # Long trajectories: tile the lane axis too, keep blocks near budget.
        tb = 8
        lc = max(128, (elem_budget // 8) // 128 * 128)
        lc = max(lc, pl.cdiv(D, 128) * 128)              # keep D <= lc
    num_bb = pl.cdiv(B, tb)
    num_lc = pl.cdiv(F, lc)
    fp = num_lc * lc

    # Resident valid-lane mask: position j is a genuine consecutive-point diff
    # iff j < F and its partner j-D lies in the same lane chunk.
    j = jnp.arange(fp, dtype=jnp.int32)
    lane_mask = ((j % lc >= D) & (j < F)).astype(jnp.int32).reshape(1, fp)

    kernel = functools.partial(_smooth_kernel, rows_total=B, point_dim=D)

    in_bytes = B * F * x.dtype.itemsize
    out_bytes = num_bb * 8 * num_lc * 128 * 4
    cost = pl.CostEstimate(flops=3 * B * F, transcendentals=0,
                           bytes_accessed=in_bytes + out_bytes + 4 * fp)

    partials = pl.pallas_call(
        kernel,
        out_shape=jax.ShapeDtypeStruct((num_bb * 8, num_lc * 128), jnp.float32),
        grid_spec=pltpu.PrefetchScalarGridSpec(
            num_scalar_prefetch=0,
            grid=(num_bb, num_lc),
            in_specs=[
                pl.BlockSpec((1, lc), lambda bb, c: (0, c)),    # resident mask
                pl.BlockSpec((tb, lc), lambda bb, c: (bb, c)),  # points slab
            ],
            out_specs=pl.BlockSpec((8, 128), lambda bb, c: (bb, c)),
        ),
        compiler_params=pltpu.CompilerParams(
            dimension_semantics=("parallel", "parallel"),
            vmem_limit_bytes=32 * 1024 * 1024,
        ),
        cost_estimate=cost,
    )(lane_mask, x)

    total = jnp.sum(partials)

    # Diffs straddling lane-chunk seams (first D lanes of every chunk after the
    # first) were masked in-kernel; add them back with a tiny XLA correction
    # that touches only B * D elements per seam.
    for c in range(1, num_lc):
        j0 = c * lc
        w = min(D, F - j0)
        a = x[:, j0:j0 + w].astype(jnp.float32)
        b = x[:, j0 - D:j0 - D + w].astype(jnp.float32)
        total = total + jnp.sum((a - b) ** 2)

    return total / jnp.float32(100.0)


if __name__ == "__main__":
    key = jax.random.PRNGKey(0)
    k1, k2, k3 = jax.random.split(key, 3)

    def reference(p):
        d = p[:, :-1, :] - p[:, 1:, :]
        return jnp.sum(d * d) / 100.0

    # 1) Small trajectory matching the module: single block, ragged rows,
    #    single (resident-mask) lane chunk.
    B, N, D = 2, 16, 3
    points = jax.random.normal(k1, (B, N, D), dtype=jnp.float32)
    out = jax.block_until_ready(smooth_forward(points))
    ref = reference(points)
    assert jnp.allclose(out, ref, rtol=1e-5, atol=1e-6), (out, ref)

    # 2) Exercise multi-block batch (ragged last block), lane-axis tiling and
    #    the wrapper-side seam correction (tiny forced block budget).
    B2, N2, D2 = 13, 100, 3
    points2 = jax.random.normal(k2, (B2, N2, D2), dtype=jnp.float32)
    out2 = jax.block_until_ready(smooth_forward(points2, target_block_bytes=4096))
    ref2 = reference(points2)
    assert jnp.allclose(out2, ref2, rtol=1e-5, atol=1e-6), (out2, ref2)

    # 3) Exercise the non-ragged (no row mask) fast path.
    B3, N3, D3 = 8, 5, 2
    points3 = jax.random.normal(k3, (B3, N3, D3), dtype=jnp.float32)
    out3 = jax.block_until_ready(smooth_forward(points3))
    ref3 = reference(points3)
    assert jnp.allclose(out3, ref3, rtol=1e-5, atol=1e-6), (out3, ref3)

    print("KERNEL_OK")
</pallas_src>

<mosaic_0001>
module attributes {stable_mosaic.version = 11 : i64} {
  func.func @_smooth_kernel(%arg0: i32, %arg1: i32, %arg2: memref<1x128xi32, #tpu.memory_space<vmem>>, %arg3: memref<8x128xf32, #tpu.memory_space<vmem>>, %arg4: memref<8x128xf32, #tpu.memory_space<vmem>>) attributes {dimension_semantics = [#tpu.dimension_semantics<parallel>, #tpu.dimension_semantics<parallel>], iteration_bounds = array<i64: 1, 1>, scalar_prefetch = 0 : i64, scratch_operands = 0 : i64, tpu.core_type = #tpu.core_type<tc>, window_params = [{transform_indices = @transform_0, window_bounds = array<i64: 1, 128>}, {transform_indices = @transform_1, window_bounds = array<i64: 8, 128>}, {transform_indices = @transform_2, window_bounds = array<i64: 8, 128>}]} {
    %c0 = arith.constant 0 : index
    %c0_0 = arith.constant 0 : index
    %0 = vector.load %arg3[%c0, %c0_0] : memref<8x128xf32, #tpu.memory_space<vmem>>, vector<8x128xf32>
    %c3_i32 = arith.constant 3 : i32
    %1 = tpu.dynamic_rotate %0 by %c3_i32 dim 1 : vector<8x128xf32>, i32 -> vector<8x128xf32>
    %2 = arith.subf %0, %1 : vector<8x128xf32>
    %c0_1 = arith.constant 0 : index
    %c0_2 = arith.constant 0 : index
    %3 = vector.load %arg2[%c0_1, %c0_2] : memref<1x128xi32, #tpu.memory_space<vmem>>, vector<1x128xi32>
    %c0_i32 = arith.constant 0 : i32
    %4 = vector.broadcast %c0_i32 : i32 to vector<1x128xi32>
    %5 = arith.cmpi ne, %3, %4 : vector<1x128xi32>
    %c8_i32 = arith.constant 8 : i32
    %6 = arith.muli %arg0, %c8_i32 : i32
    %c2_i32 = arith.constant 2 : i32
    %7 = arith.subi %c2_i32, %6 : i32
    %8 = tpu.iota {dimensions = array<i32: 0>} : vector<8x128xi32>
    %9 = vector.broadcast %7 : i32 to vector<8x128xi32>
    %10 = arith.cmpi slt, %8, %9 : vector<8x128xi32>
    %11 = vector.broadcast %5 : vector<1x128xi1> to vector<8x128xi1>
    %12 = arith.andi %10, %11 : vector<8x128xi1>
    %cst = arith.constant 0.000000e+00 : f32
    %13 = vector.broadcast %cst : f32 to vector<8x128xf32>
    %14 = arith.select %12, %2, %13 : vector<8x128xi1>, vector<8x128xf32>
    %15 = arith.mulf %14, %14 : vector<8x128xf32>
    %16 = vector.shape_cast %15 : vector<8x128xf32> to vector<1x8x128xf32>
    %cst_3 = arith.constant dense<0.000000e+00> : vector<8x128xf32>
    %17 = vector.multi_reduction <add>, %16, %cst_3 [0] : vector<1x8x128xf32> to vector<8x128xf32>
    %c0_4 = arith.constant 0 : index
    %c0_5 = arith.constant 0 : index
    %18 = vector.load %arg4[%c0_4, %c0_5] : memref<8x128xf32, #tpu.memory_space<vmem>>, vector<8x128xf32>
    tpu.vector_store %arg4[%c0_4, %c0_5], %17 {strides = array<i32>} : memref<8x128xf32, #tpu.memory_space<vmem>>, vector<8x128xf32>,
    return
  }
  func.func @transform_0(%arg0: i32, %arg1: i32) -> (i32, i32) {
    %c0_i32 = arith.constant 0 : i32
    %c0_i32_0 = arith.constant 0 : i32
    return %c0_i32, %arg1 : i32, i32
  }
  func.func @transform_1(%arg0: i32, %arg1: i32) -> (i32, i32) {
    %c0_i32 = arith.constant 0 : i32
    return %arg0, %arg1 : i32, i32
  }
  func.func @transform_2(%arg0: i32, %arg1: i32) -> (i32, i32) {
    %c0_i32 = arith.constant 0 : i32
    return %arg0, %arg1 : i32, i32
  }
}

</mosaic_0001>

<bundles_post_ra>
// kernel: tpu_custom_call.1
= control target key start
LH: loop header
LB: loop body
LE: loop exit
PB: predicated region body
PF: predicated region fallthrough
CT: control target
= control target key end

     0   :  { %7 = vsyncpa [#allocation3], 0  ;;  %s196_s0 = inlined_call_operand.hbm [shape: s32[1,128], index: 0, kind: input, shape index: {}]   ;;  %s197_s1 = inlined_call_operand.hbm [shape: f32[2,48], index: 1, kind: input, shape index: {}]   ;;  %s198_s2 = inlined_call_operand.hbm [shape: f32[8,128], index: 2, kind: output, shape index: {}]  }
   0x1   :  { %8 = vsyncpa [#allocation6], 0 }
   0x2   :  { %9 = vsyncpa [#allocation4], 0  ;;  %s15_s11 = sshll.u32 %s196_s0, 4  ;;  %s165_s12 = smov [#allocation2]   ;;  %s16_s11 = int_to_ptr.hbm [resolvable:$true] %s15_s11 }
   0x3   :  { %s17_s13 = sshll.u32 %s165_s12, 4  ;;  %s18_s13 = int_to_ptr.vmem [resolvable:$true] %s17_s13 }
   0x4   :  { %20 = dma.hbm_to_vmem [thread:$0]  %s16_s11, 16, %s18_s13, [#allocation3]  }
   0x5   :  { %24 = vsyncadd [#allocation6], 96  ;;  %s25_s16 = sshll.u32 %s197_s1, 4  ;;  %s166_s17 = smov [#allocation5]   ;;  %s26_s16 = int_to_ptr.hbm [resolvable:$true] %s25_s16 }
   0x6   :  { %s27_s18 = sshll.u32 %s166_s17, 4  ;;  %s167_s19 = smov 32   ;;  %s28_s18 = int_to_ptr.vmem [resolvable:$true] %s27_s18 }
   0x7   :  { %s168_s20 = smov 2  }
   0x8   :  { %33 = dma.hbm_to_vmem [thread:$0]  %s26_s16, 32, %s28_s18, [#allocation6], %s167_s19, %s167_s19, %s168_s20  }
   0x9   :  { %159 = dma.done.wait [#allocation3], 16  }
   0xa   :  { %160 = vsyncadd [#allocation3], 4294967280 }
   0xb   :  { %161 = dma.done.wait [#allocation6], 128  }
   0xc   :  { %162 = vsyncadd [#allocation6], 4294967168  ;;  %v42_v0 = vld [vmem:[#allocation5] sm:$0xff]  ;;  %s169_s0 = smov 3   ;;  %v46_v1 = vld [vmem:[#allocation2] sm:$0x1]  ;;  %v50_v2 = vlaneseq }
   0xd   :  { %43 = vrot.lane.b32.xlu0 %v42_v0, %s169_s0  ;;  %vm47_vm0 = vcmp.ne.s32.totalorder %v46_v1, 0  ;;  %v170_v3 = vmov 0   ;;  %s171_s1 = smov [#allocation7]   ;;  %s69_s24 = sshll.u32 %s198_s2, 4  ;;  %s70_s24 = int_to_ptr.hbm [resolvable:$true] %s69_s24 }
   0xe   :  { %v54_v4 = vsel %vm47_vm0, 1, %v170_v3  ;;  %v51_v5 = vshrl.u32 %v50_v2, 7  ;;  %s67_s21 = sshll.u32 %s171_s1, 4  ;;  %s68_s21 = int_to_ptr.vmem [resolvable:$true] %s67_s21 }
   0xf   :  { %v55_v6 = vperm.slane %v54_v4, 0 }
  0x10   :  { %vm53_vm1 = vcmp.lt.s32.totalorder %v51_v5, 2 }
  0x11   :  { %vm56_vm2 = vcmp.eq.s32.totalorder %v55_v6, 1 }
  0x12   :  { %vm57_vm3 = vmand %vm53_vm1, %vm56_vm2 }
  0x7f   :  { %v44_v7 = vpop.permute.xlu0 %43 }
  0x80   :  { %v45_v8 = vsub.f32 %v42_v0, %v44_v7 }
  0x82   :  { %v58_v9 = vsel %vm57_vm3, %v45_v8, 0.0 }
  0x83   :  { %v59_v10 = vmul.f32 %v58_v9, %v58_v9 }
  0x85   :  { %61 = vst [vmem:[#allocation7] sm:$0xff] %v59_v10 }
  0x86   :  { %72 = dma.vmem_to_hbm [thread:$0]  %s68_s21, 128, %s70_s24, [#allocation4]  }
  0x87   :  { %163 = dma.done.wait [#allocation4], 128  }
  0x88   :  { %164 = vsyncadd [#allocation4], 4294967168 }
  0x89   :  { %77 = vsyncpa [#allocation3], 1 }
  0x8a   :  { %78 = vsyncpa [#allocation6], 1 }
  0x8b   :  { %79 = vsyncpa [#allocation4], 1 }

</bundles_post_ra>
